<compile_context>
chip_gen: v7x
topology: tpu7x:2x2x1
jax: 0.10.0
libtpu: 0.0.40
codegen_flags: <defaults>
</compile_context>

<pallas_src>
import functools

import numpy as np

import jax
import jax.numpy as jnp
from jax import lax
from jax.experimental import pallas as pl
from jax.experimental.pallas import tpu as pltpu


# ------------------------------- kernel ---------------------------------------


def _ctx_scatter_kernel(dst_off_ref, ctx_ref, base_ref, prompts_ref, sems, *,
                        split_a, n_ctx, n_cls, c_tile, shared_ctx):
    """Write the ctx rows of every class in this tile into the (aliased,
    HBM-resident) prompts buffer.  All constant rows are already in place."""
    del base_ref  # same HBM buffer as prompts_ref (input_output_aliases)

    size_a = split_a            # ctx rows that land at the fixed offset 1
    size_b = n_ctx - split_a    # ctx rows that land at a per-class offset
    c0 = pl.program_id(0) * c_tile
    n_valid = jnp.minimum(c_tile, n_cls - c0)   # classes in this (maybe partial) tile

    def copy_a(j):
        src_c = 0 if shared_ctx else j
        return pltpu.make_async_copy(
            ctx_ref.at[pl.ds(src_c, 1), pl.ds(0, size_a), :],
            prompts_ref.at[pl.ds(c0 + j, 1), pl.ds(1, size_a), :],
            sems.at[j, 0])

    def copy_b(j):
        src_c = 0 if shared_ctx else j
        dst_row = dst_off_ref[c0 + j]            # scalar read from SMEM table
        return pltpu.make_async_copy(
            ctx_ref.at[pl.ds(src_c, 1), pl.ds(split_a, size_b), :],
            prompts_ref.at[pl.ds(c0 + j, 1), pl.ds(dst_row, size_b), :],
            sems.at[j, 1])

    def start_one(j, carry):
        @pl.when(j < n_valid)
        def _():
            if size_a > 0:
                copy_a(j).start()
            if size_b > 0:
                copy_b(j).start()
        return carry

    def wait_one(j, carry):
        @pl.when(j < n_valid)
        def _():
            if size_a > 0:
                copy_a(j).wait()
            if size_b > 0:
                copy_b(j).wait()
        return carry

    lax.fori_loop(0, c_tile, start_one, 0)   # issue every ctx-row DMA for the tile
    lax.fori_loop(0, c_tile, wait_one, 0)    # then drain (keeps them all in flight)


# --------------------------- init-time assembly --------------------------------


def prompt_learner_init(token_prefix, token_suffix, name_lens, n_ctx,
                        class_token_position="end"):
    """Host-side, init-time assembly of the constant prompt rows (the analogue
    of the module's __init__ register_buffer work) plus the per-class ctx
    destination-row table used by the forward kernel."""
    n_cls, _, dim = token_prefix.shape
    suf_len = token_suffix.shape[1]
    seq_len = 1 + n_ctx + suf_len

    pre = np.asarray(token_prefix)
    suf = np.asarray(token_suffix)
    base = np.zeros((n_cls, seq_len, dim), dtype=pre.dtype)
    dst_off = np.zeros((n_cls,), dtype=np.int32)

    if class_token_position == "end":
        split_a = n_ctx
        base[:, 0:1] = pre
        base[:, 1 + n_ctx:] = suf
    elif class_token_position in ("middle", "front"):
        half = n_ctx // 2
        split_a = half if class_token_position == "middle" else 0
        for i in range(n_cls):
            nl = int(name_lens[i])
            base[i, 0:1] = pre[i]
            cls_row = 1 + split_a                      # class-name tokens
            base[i, cls_row:cls_row + nl] = suf[i, :nl]
            tail_row = 1 + n_ctx + nl                  # remaining suffix
            base[i, tail_row:] = suf[i, nl:]
            dst_off[i] = 1 + split_a + nl              # second ctx chunk offset
    else:
        raise ValueError(class_token_position)

    return dict(base_prompts=jnp.asarray(base),
                ctx_dst_off=jnp.asarray(dst_off),
                split_a=split_a, n_ctx=n_ctx, seq_len=seq_len)


def _choose_class_tile(n_cls, n_ctx, dim, itemsize):
    # Per-step VMEM = double-buffered ctx block only (the prompts never leave
    # HBM): 2 * c_tile * n_ctx * dim * itemsize.  A 4 MiB budget stays far
    # below v5e's 16 MiB default scoped VMEM (and v6e/v7x's 32 MiB).
    budget = 4 * 1024 * 1024
    per_class = 2 * n_ctx * dim * itemsize
    tile = max(1, budget // max(per_class, 1))
    # Bound per-step DMA count / DMA-semaphore array size.
    tile = min(tile, 32)
    # v7x has two TensorCores: keep >=2 grid steps so the "parallel" class
    # axis can shard across them (neutral on single-TC v5e/v6e).
    tile = min(tile, max(1, pl.cdiv(n_cls, 2)))
    return int(min(tile, n_cls))


def prompt_learner_forward(ctx, base_prompts, ctx_dst_off, *, n_ctx, split_a,
                           c_tile=None):
    """Pallas forward: in-place scatter of the ctx rows into the persistent
    base-prompts buffer (aliased input -> output)."""
    n_cls, seq_len, dim = base_prompts.shape
    out_dtype = base_prompts.dtype

    shared_ctx = (ctx.ndim == 2)          # torch: unsqueeze(0).expand(n_cls,..)
    ctx3 = (ctx[None] if shared_ctx else ctx).astype(out_dtype)

    if c_tile is None:
        c_tile = _choose_class_tile(n_cls, n_ctx, dim,
                                    jnp.dtype(out_dtype).itemsize)
    grid = (pl.cdiv(n_cls, c_tile),)

    # Shared ctx: a single (1, n_ctx, dim) block re-used by every class tile.
    ctx_block = (1, n_ctx, dim) if shared_ctx else (c_tile, n_ctx, dim)
    ctx_map = (lambda i: (0, 0, 0)) if shared_ctx else (lambda i: (i, 0, 0))

    kernel = functools.partial(_ctx_scatter_kernel, split_a=split_a,
                               n_ctx=n_ctx, n_cls=n_cls, c_tile=c_tile,
                               shared_ctx=shared_ctx)

    return pl.pallas_call(
        kernel,
        out_shape=jax.ShapeDtypeStruct((n_cls, seq_len, dim), out_dtype),
        grid=grid,
        in_specs=[
            pl.BlockSpec(memory_space=pltpu.MemorySpace.SMEM),   # dst-row table
            pl.BlockSpec(ctx_block, ctx_map),                    # ctx (pipelined VMEM)
            pl.BlockSpec(memory_space=pl.ANY),                   # base prompts (HBM)
        ],
        out_specs=pl.BlockSpec(memory_space=pl.ANY),             # aliased w/ base
        scratch_shapes=[pltpu.SemaphoreType.DMA((c_tile, 2))],
        input_output_aliases={2: 0},
        compiler_params=pltpu.CompilerParams(
            dimension_semantics=("parallel",),
            vmem_limit_bytes=32 * 1024 * 1024),
    )(ctx_dst_off, ctx3, base_prompts)


# ---------------------------- pure-JAX reference -------------------------------


def prompt_learner_reference(ctx, prefix, suffix, name_lens, n_ctx, pos):
    n_cls = prefix.shape[0]
    if ctx.ndim == 2:
        ctx = jnp.broadcast_to(ctx[None], (n_cls,) + ctx.shape)
    if pos == "end":
        return jnp.concatenate([prefix, ctx, suffix], axis=1)
    half = n_ctx // 2
    prompts = []
    for i in range(n_cls):
        nl = int(name_lens[i])
        prefix_i = prefix[i:i + 1]
        class_i = suffix[i:i + 1, :nl]
        suffix_i = suffix[i:i + 1, nl:]
        if pos == "middle":
            p = jnp.concatenate(
                [prefix_i, ctx[i:i + 1, :half], class_i,
                 ctx[i:i + 1, half:], suffix_i], axis=1)
        else:  # 'front'
            p = jnp.concatenate([prefix_i, class_i, ctx[i:i + 1], suffix_i],
                                axis=1)
        prompts.append(p)
    return jnp.concatenate(prompts, axis=0)


# ---------------------------------- main ---------------------------------------


if __name__ == "__main__":
    # Small shapes consistent with the module: n_cls classes, context length
    # n_ctx, token-embedding dim, seq_len = 1 + n_ctx + suf_len.
    # n_cls=3 with c_tile=2 also exercises a partial (non-divisible) last tile.
    n_cls, n_ctx, dim = 3, 4, 128
    suf_len = 11
    name_lens = [1, 2, 3]  # deterministic stand-in for _tokenizer.encode lens
    # TODO(synk): the real module builds token_prefix/token_suffix from
    # clip.tokenize + clip_model.token_embedding at __init__; buffers are
    # synthesized deterministically here instead of loading a checkpoint.

    key = jax.random.PRNGKey(0)
    k_pre, k_suf, k_ctx, k_ctx3 = jax.random.split(key, 4)
    token_prefix = jax.random.normal(k_pre, (n_cls, 1, dim), dtype=jnp.float32)
    token_suffix = jax.random.normal(k_suf, (n_cls, suf_len, dim),
                                     dtype=jnp.float32)
    ctx_shared = jax.random.normal(k_ctx, (n_ctx, dim), dtype=jnp.float32)
    ctx_percls = jax.random.normal(k_ctx3, (n_cls, n_ctx, dim),
                                   dtype=jnp.float32)

    ok = True
    for ctx_in in (ctx_shared, ctx_percls):
        for pos in ("end", "middle", "front"):
            state = prompt_learner_init(token_prefix, token_suffix, name_lens,
                                        n_ctx, pos)
            split_a = state["split_a"]

            def fwd_fn(ctx_arg, base_arg, off_arg, _sa=split_a):
                return prompt_learner_forward(ctx_arg, base_arg, off_arg,
                                               n_ctx=n_ctx, split_a=_sa)

            # Donate the persistent base-prompts buffer so the kernel's
            # input_output_aliases update really is in-place (zero extra copy).
            fwd = jax.jit(fwd_fn, donate_argnums=(1,))
            out = fwd(ctx_in, state["base_prompts"], state["ctx_dst_off"])
            out = jax.block_until_ready(out)

            ref = prompt_learner_reference(ctx_in, token_prefix, token_suffix,
                                           name_lens, n_ctx, pos)
            if out.shape != (n_cls, 1 + n_ctx + suf_len, dim):
                ok = False
            if not np.allclose(np.asarray(out), np.asarray(ref), atol=1e-6):
                ok = False

    if ok:
        print("KERNEL_OK")
    else:
        raise SystemExit("mismatch vs reference")
</pallas_src>

<mosaic_0001>
module attributes {stable_mosaic.version = 11 : i64} {
  func.func @_ctx_scatter_kernel(%arg0: i32, %arg1: memref<3xi32, #tpu.memory_space<smem>>, %arg2: memref<1x4x128xf32, #tpu.memory_space<vmem>>, %arg3: memref<3x16x128xf32, #tpu.memory_space<any>>, %arg4: memref<3x16x128xf32, #tpu.memory_space<any>>, %arg5: memref<2x2x!tpu.dma_semaphore, #tpu.memory_space<semaphore_mem>>) attributes {dimension_semantics = [#tpu.dimension_semantics<parallel>], iteration_bounds = array<i64: 2>, scalar_prefetch = 0 : i64, scratch_operands = 1 : i64, tpu.core_type = #tpu.core_type<tc>, window_params = [{transform_indices = @transform_0, window_bounds = array<i64: 3>}, {pipeline_mode = #tpu.pipeline_mode<synchronous>, transform_indices = @transform_1, window_bounds = array<i64: 1, 4, 128>}, {}, {}]} {
    %c2_i32 = arith.constant 2 : i32
    %0 = arith.muli %arg0, %c2_i32 : i32
    %c3_i32 = arith.constant 3 : i32
    %1 = arith.subi %c3_i32, %0 : i32
    %c2_i32_0 = arith.constant 2 : i32
    %2 = arith.minsi %c2_i32_0, %1 : i32
    %c0_i32 = arith.constant 0 : i32
    %c2_i32_1 = arith.constant 2 : i32
    %3 = arith.addi %c0_i32, %c2_i32_1 : i32
    %c1_i32 = arith.constant 1 : i32
    scf.for %arg6 = %c0_i32 to %3 step %c1_i32  : i32 {
      %5 = arith.cmpi slt, %arg6, %2 : i32
      %6 = arith.extui %5 : i1 to i32
      %c0_i32_7 = arith.constant 0 : i32
      %7 = arith.cmpi ne, %6, %c0_i32_7 : i32
      scf.if %7 {
        %8 = arith.addi %0, %arg6 : i32
        %c0_i32_8 = arith.constant 0 : i32
        %c0_i32_9 = arith.constant 0 : i32
        %c0_i32_10 = arith.constant 0 : i32
        %c0_i32_11 = arith.constant 0 : i32
        %9 = tpu.memref_slice %arg2[%c0_i32_9, %c0_i32_10, %c0_i32_11] : memref<1x4x128xf32, #tpu.memory_space<vmem>> -> memref<1x4x128xf32, #tpu.memory_space<vmem>>
        %c1_i32_12 = arith.constant 1 : i32
        %c0_i32_13 = arith.constant 0 : i32
        %10 = tpu.memref_slice %arg4[%8, %c1_i32_12, %c0_i32_13] : memref<3x16x128xf32, #tpu.memory_space<any>> -> memref<1x4x128xf32, #tpu.memory_space<any>>
        %11 = tpu.memref_slice %arg5[%arg6, %c0_i32_8] : memref<2x2x!tpu.dma_semaphore, #tpu.memory_space<semaphore_mem>> -> memref<1x1x!tpu.dma_semaphore, #tpu.memory_space<semaphore_mem>>
        %12 = tpu.memref_squeeze %11 : memref<1x1x!tpu.dma_semaphore, #tpu.memory_space<semaphore_mem>> -> memref<!tpu.dma_semaphore, #tpu.memory_space<semaphore_mem>>
        tpu.enqueue_dma source(%9 : memref<1x4x128xf32, #tpu.memory_space<vmem>>) target(%10 : memref<1x4x128xf32, #tpu.memory_space<any>>) target_semaphore(%12 : memref<!tpu.dma_semaphore, #tpu.memory_space<semaphore_mem>>)
      } else {
      }
    }
    %c2_i32_2 = arith.constant 2 : i32
    %c0_i32_3 = arith.constant 0 : i32
    %c2_i32_4 = arith.constant 2 : i32
    %4 = arith.addi %c0_i32_3, %c2_i32_4 : i32
    %c1_i32_5 = arith.constant 1 : i32
    scf.for %arg6 = %c0_i32_3 to %4 step %c1_i32_5  : i32 {
      %5 = arith.cmpi slt, %arg6, %2 : i32
      %6 = arith.extui %5 : i1 to i32
      %c0_i32_7 = arith.constant 0 : i32
      %7 = arith.cmpi ne, %6, %c0_i32_7 : i32
      scf.if %7 {
        %8 = arith.addi %0, %arg6 : i32
        %c0_i32_8 = arith.constant 0 : i32
        %c0_i32_9 = arith.constant 0 : i32
        %c0_i32_10 = arith.constant 0 : i32
        %c0_i32_11 = arith.constant 0 : i32
        %9 = tpu.memref_slice %arg2[%c0_i32_9, %c0_i32_10, %c0_i32_11] : memref<1x4x128xf32, #tpu.memory_space<vmem>> -> memref<1x4x128xf32, #tpu.memory_space<vmem>>
        %c1_i32_12 = arith.constant 1 : i32
        %c0_i32_13 = arith.constant 0 : i32
        %10 = tpu.memref_slice %arg4[%8, %c1_i32_12, %c0_i32_13] : memref<3x16x128xf32, #tpu.memory_space<any>> -> memref<1x4x128xf32, #tpu.memory_space<any>>
        %11 = tpu.memref_slice %arg5[%arg6, %c0_i32_8] : memref<2x2x!tpu.dma_semaphore, #tpu.memory_space<semaphore_mem>> -> memref<1x1x!tpu.dma_semaphore, #tpu.memory_space<semaphore_mem>>
        %12 = tpu.memref_squeeze %11 : memref<1x1x!tpu.dma_semaphore, #tpu.memory_space<semaphore_mem>> -> memref<!tpu.dma_semaphore, #tpu.memory_space<semaphore_mem>>
        tpu.wait_dma2 semaphore(%12 : memref<!tpu.dma_semaphore, #tpu.memory_space<semaphore_mem>>) src(%9 : memref<1x4x128xf32, #tpu.memory_space<vmem>>) dst(%10 : memref<1x4x128xf32, #tpu.memory_space<any>>)
      } else {
      }
    }
    %c2_i32_6 = arith.constant 2 : i32
    return
  }
  func.func @transform_0(%arg0: i32) -> i32 {
    %c0_i32 = arith.constant 0 : i32
    %c0_i32_0 = arith.constant 0 : i32
    return %c0_i32 : i32
  }
  func.func @transform_1(%arg0: i32) -> (i32, i32, i32) {
    %c0_i32 = arith.constant 0 : i32
    %c0_i32_0 = arith.constant 0 : i32
    %c0_i32_1 = arith.constant 0 : i32
    %c0_i32_2 = arith.constant 0 : i32
    return %c0_i32, %c0_i32_0, %c0_i32_1 : i32, i32, i32
  }
}

</mosaic_0001>

<bundles_post_ra>
// kernel: fwd_fn.1
= control target key start
LH: loop header
LB: loop body
LE: loop exit
PB: predicated region body
PF: predicated region fallthrough
CT: control target
= control target key end

     0   :  { %8 = vsyncpa [#allocation5], 0  ;;  %s543_s0 = inlined_call_operand.vmem [shape: s32[3], index: 0, kind: input, shape index: {}]   ;;  %s544_s1 = inlined_call_operand.hbm [shape: f32[1,4,128], index: 1, kind: input, shape index: {}]   ;;  %s545_s2 = inlined_call_operand.hbm [shape: f32[3,16,128], index: 2, kind: input, shape index: {}, may-alias: {2,3}]   ;;  %s546_s3 = inlined_call_operand.hbm [shape: f32[3,16,128], index: 3, kind: output, shape index: {}, may-alias: {2,3}]  }
   0x1   :  { %9 = vsyncpa [#allocation4], 0  ;;  %s423_s12 = smov 0  }
   0x2 LB: > { %s58_s2 = sshll.u32 %s543_s0, 4  ;;  %s219_s15 = sadd.s32 4294967295, %s391_s12   ;;  %s391_s12 = sphi %s423_s12, %s15_s12   ;;  %s59_s2 = int_to_ptr.vmem [resolvable:$true] %s58_s2 }
   0x3   : > { %p221_p0 = scmp.lt.s32.totalorder %s391_s12, 1  ;;  %p260_p1 = scmp.ge.s32.totalorder %s391_s12, 1 }
   0x4   : > { %p436_p2 = scmp.eq.s32.totalorder %s219_s15, 0  ;;  %s401_s18 = smov [#allocation6]  }
   0x5   : > { %s69_s19 = sshll.u32 %s401_s18, 4  ;;  %s293_s20 = scalar_lea.vmem %s59_s2, 16  ;;  %s446_s19 = int_to_ptr.vmem [resolvable:$true] %s69_s19 }
   0x6   : > { %p442_p3 = pnand %p436_p2, %p260_p1  ;;  %p294_p4 = scmp.ne.s32.totalorder %s59_s2, %s293_s20 }
   0x7   : > { %p301_p8 = scmp.lt.s32.totalorder %s59_s2, %s59_s2  ;;  %p302_p9 = scmp.lt.s32.totalorder %s293_s20, %s293_s20 }
   0x8   : > { %p295_p5 = pneg %p442_p3 }
   0x9   : > { %p303_p10 = por %p302_p9, %p301_p8 }
   0xa   : > { %p296_p6 = pnand %p295_p5, %p294_p4 }
   0xc   : > { %p297_p7 = pneg %p296_p6 }
   0xe   : > { %p304_p11 = pnand %p303_p10, %p297_p7 }
  0x10   : > { %307 = shalt.err (!%p304_p11)
}
  0x11   : > { %s402_s21 = smov [#allocation3]   ;;  %s308_s24 = scalar_lea.hbm %s544_s1, 64 }
  0x12   : > { %256 = dma.vmem_to_smem (!%p442_p3), %s59_s2, 16, %s402_s21, [#allocation5]  }
  0x13   : > { %p309_p12 = scmp.ne.s32.totalorder %s544_s1, %s308_s24  ;;  %p315_p4 = scmp.lt.u32.totalorder %s308_s24, %s544_s1 }
  0x15   : > { %p311_p13 = pnand %p309_p12, %p295_p5 }
  0x17   : > { %p312_p1 = pneg %p311_p13 }
  0x19   : > { %p317_p6 = pnand %p315_p4, %p312_p1 }
  0x1b   : > { %320 = shalt.err (!%p317_p6)
}
  0x1c   : > { %s468_s29 = scalar_lea.vmem %s446_s19, 64  ;;  %p329_p10 = scmp.lt.s32.totalorder %s446_s19, %s446_s19 }
  0x1d   : > { %p322_p7 = scmp.ne.s32.totalorder %s446_s19, %s468_s29  ;;  %p330_p11 = scmp.lt.s32.totalorder %s468_s29, %s468_s29 }
  0x1f   : > { %p324_p8 = pnand %p322_p7, %p295_p5  ;;  %p482_p12 = por %p330_p11, %p329_p10 }
  0x21   : > { %p325_p9 = pneg %p324_p8 }
  0x23   : > { %p332_p13 = pnand %p482_p12, %p325_p9 }
  0x25   : > { %335 = shalt.err (!%p332_p13)
}
  0x26   : > { %259 = dma.hbm_to_vmem [thread:$0]  (!%p442_p3), %s544_s1, 64, %s446_s19, [#allocation4]  }
  0x27   : > { %80 = sbr.rel (%p221_p0) target bundleno = 101 (0x65), region = 28 }
  0x2e   : > { %378 = dma.done.wait (%p436_p2), [#allocation5], 16  }
  0x2f   : > { %380 = vsyncadd (%p436_p2), [#allocation5], 4294967280 }
  0x30   : > { %382 = dma.done.wait (%p436_p2), [#allocation4], 64  }
  0x31   : > { %384 = vsyncadd (%p436_p2), [#allocation4], 4294967232 }
  0x32   : > { %90 = sfence }
  0x33   : > { %s506_s6 = sshll.u32 %s219_s15, 1  ;;  %s511_s8 = smov 0  }
  0x34   : > { %s96_s7 = ssub.s32 3, %s506_s6 }
  0x35   : > { %p97_p0 = scmp.lt.s32.totalorder %s96_s7, 2 }
  0x37   : > { %s551_s7 = smov (!%p97_p0, %s96_s7), 2 }
  0x38 LB: >> { %p265_p2 = scmp.lt.s32.totalorder %s395_s8, %s551_s7  ;;  %s177_s9 = sadd.s32 %s395_s8, %s506_s6  ;;  %s395_s8 = sphi %s511_s8, %s104_s8  }
  0x39   : >> { %s233_s10 = sshll.u32 %s395_s8, 1  ;;  %s240_s11 = sshll.u32 %s177_s9, 8 }
  0x3a   : >> { %s180_s2 = scalar_lea.hbm %s546_s3, %s240_s11  ;;  %s115_s16 = scalar_lea.sflag [#allocation2], %s233_s10 }
  0x3b   : >> { %s181_s15 = scalar_lea.hbm %s180_s2, 16  ;;  %p338_p3 = pnand %p322_p7, %p265_p2 }
  0x3d   : >> { %p339_p5 = pneg %p338_p3 }
  0x3f   : >> { %p346_p1 = pnand %p339_p5, %p482_p12 }
  0x41   : >> { %349 = shalt.err (!%p346_p1)  }
  0x42   : >> { %s364_s17 = scalar_lea.hbm %s180_s2, 80  ;;  %s354_s21 = scalar_lea.hbm %s546_s3, 768 }
  0x43   : >> { %p351_p4 = scmp.ne.s32.totalorder %s181_s15, %s364_s17  ;;  %p355_p9 = scmp.lt.u32.totalorder %s181_s15, %s546_s3 }
  0x44   : >> { %p356_p10 = scmp.lt.u32.totalorder %s354_s21, %s364_s17  ;;  %p358_p13 = scmp.lt.u32.totalorder %s364_s17, %s181_s15 }
  0x45   : >> { %p352_p6 = pnand %p351_p4, %p265_p2 }
  0x46   : >> { %p357_p11 = por %p356_p10, %p355_p9 }
  0x47   : >> { %p353_p8 = pneg %p352_p6 }
  0x48   : >> { %p359_p0 = por %p358_p13, %p357_p11 }
  0x4a   : >> { %p360_p3 = pnand %p359_p0, %p353_p8 }
  0x4c   : >> { %363 = shalt.err (!%p360_p3)  }
  0x4d   : >> { %250 = dma.vmem_to_hbm [thread:$0]  (%p265_p2), %s446_s19, 64, %s181_s15, %s115_s16 }
  0x4e   : >> { %s104_s8 = sadd.s32 1, %s395_s8  }
  0x4f   : >> { %p101_p5 = scmp.ge.s32.totalorder %s104_s8, 2  }
  0x50   : > { %s397_s24 = smov (%p101_p5), 0  }
  0x51   : > { %103 = sbr.rel (!%p101_p5) target bundleno = 56 (0x38), region = 81 }
  0x58 LB: >> { %p266_p1 = scmp.lt.s32.totalorder %s399_s24, %s551_s7  ;;  %s235_s25 = sshll.u32 %s399_s24, 1  ;;  %s399_s24 = sphi %s397_s24, %s132_s24  }
  0x59   : >> { %s138_s26 = scalar_lea.sflag [#allocation2], %s235_s25 }
  0x5a   : >> { %386 = dma.done.wait (%p266_p1), %s138_s26, 64 }
  0x5b   : >> { %388 = vsyncadd (%p266_p1), %s138_s26, 4294967232  ;;  %s132_s24 = sadd.s32 1, %s399_s24  }
  0x5c   : >> { %p129_p4 = scmp.ge.s32.totalorder %s132_s24, 2  }
  0x5e   : > { %131 = sbr.rel (!%p129_p4) target bundleno = 88 (0x58), region = 92 }
  0x65 PF: > { %s15_s12 = sadd.s32 1, %s391_s12  }
  0x66   : > { %p12_p2 = scmp.ge.s32.totalorder %s15_s12, 3  }
  0x68   :  { %14 = sbr.rel (!%p12_p2) target bundleno = 2 (0x2), region = 103 }
  0x6f   :  { %143 = vsyncpa [#allocation4], 1 }
  0x70   :  { %145 = vsyncpa [#allocation4 + $0x1], 1 }
  0x71   :  { %146 = vsyncpa [#allocation5], 1 }
  0x72   :  { %148 = vsyncpa [#allocation5 + $0x1], 1 }
  0x73   :  { %149 = vsyncmov [#allocation2] }
  0x76   :  { %s150_s19 = vpop.sfrf %149 }
  0x77   :  { %p236_p7 = scmp.ne.s32.totalorder %s150_s19, 0 }
  0x79   :  { %154 = shalt.err (%p236_p7)  }
  0x7a   :  { %156 = vsyncmov [#allocation2 + $0x1] }
  0x7d   :  { %s157_s27 = vpop.sfrf %156 }
  0x7e   :  { %p237_p12 = scmp.ne.s32.totalorder %s157_s27, 0 }
  0x80   :  { %161 = shalt.err (%p237_p12)  }
  0x81   :  { %163 = vsyncmov [#allocation2 + $0x2] }
  0x84   :  { %s164_s28 = vpop.sfrf %163 }
  0x85   :  { %p238_p6 = scmp.ne.s32.totalorder %s164_s28, 0 }
  0x87   :  { %168 = shalt.err (%p238_p6)  }
  0x88   :  { %170 = vsyncmov [#allocation2 + $0x3] }
  0x8b   :  { %s171_s29 = vpop.sfrf %170 }
  0x8c   :  { %p239_p8 = scmp.ne.s32.totalorder %s171_s29, 0 }
  0x8e   :  { %175 = shalt.err (%p239_p8)  }

</bundles_post_ra>
